<compile_context>
chip_gen: v5e
topology: v5e:2x2
jax: 0.10.0
libtpu: 0.0.40
codegen_flags: <defaults>
</compile_context>

<pallas_src>
import functools

import jax
import jax.numpy as jnp
from jax import lax
from jax.experimental import pallas as pl
from jax.experimental.pallas import tpu as pltpu

BN_EPS = 1e-5
_VMEM_LIMIT_BYTES = 48 * 1024 * 1024


def _stats_kernel(x_ref, w_ref, b_ref, sum_ref, sumsq_ref):
    """Partial BN statistics of y = W @ x + b for one (batch, N-tile).

    x_ref: (1, Cin, TN)   w_ref: (Cout, Cin)   b_ref: (Cout, 1)
    sum_ref/sumsq_ref: (1, Cout, 1) resident accumulators across the N-tile axis.
    """
    n = pl.program_id(1)

    @pl.when(n == 0)
    def _init():
        sum_ref[...] = jnp.zeros_like(sum_ref)
        sumsq_ref[...] = jnp.zeros_like(sumsq_ref)

    # MXU matmul in native input dtype, f32 accumulation.
    y = jnp.dot(w_ref[...], x_ref[0], preferred_element_type=jnp.float32)  # (Cout, TN)
    y = y + b_ref[...]
    sum_ref[0] = sum_ref[0] + jnp.sum(y, axis=1, keepdims=True)
    sumsq_ref[0] = sumsq_ref[0] + jnp.sum(y * y, axis=1, keepdims=True)


def _conv_affine_relu_kernel(x_ref, w_ref, scale_ref, shift_ref, o_ref, *, with_relu):
    """y = scale * (W @ x) + shift [+ ReLU] for one (batch, N-tile)."""
    y = jnp.dot(w_ref[...], x_ref[0], preferred_element_type=jnp.float32)  # (Cout, TN)
    y = y * scale_ref[...] + shift_ref[...]        # BN/bias folded into f32 scale/shift
    if with_relu:
        y = jnp.maximum(y, 0.0)
    o_ref[0] = y.astype(o_ref.dtype)


def _choose_tile_n(n, target):
    """Largest multiple of 128 <= target dividing N; full N if N is not 128-aligned."""
    if n <= target or n % 128 != 0:
        return n
    tn = max(128, (target // 128) * 128)
    while n % tn != 0:
        tn -= 128
    return tn


def conv1d_forward(x, weight, bias, gamma=None, beta=None, *,
                   with_bn=True, with_relu=True, target_tile_n=512):
    """Forward of the Conv1D module.

    x: (B, Cin, N); weight: (Cout, Cin, 1); bias/gamma/beta: (Cout,).
    Returns (B, Cout, N).
    """
    B, Cin, N = x.shape
    Cout = weight.shape[0]
    M = B * N

    w = weight[:, :, 0]                     # (Cout, Cin), native dtype for the MXU
    bias_f32 = bias.astype(jnp.float32)

    TN = _choose_tile_n(N, target_tile_n)
    nN = N // TN
    grid = (B, nN)

    x_spec = pl.BlockSpec((1, Cin, TN), lambda b, n: (b, 0, n))
    w_spec = pl.BlockSpec((Cout, Cin), lambda b, n: (0, 0))
    vec_spec = pl.BlockSpec((Cout, 1), lambda b, n: (0, 0))

    itemsize = x.dtype.itemsize
    conv_flops = 2 * M * Cin * Cout
    w_bytes = Cout * Cin * w.dtype.itemsize

    if with_bn:
        psum, psumsq = pl.pallas_call(
            _stats_kernel,
            out_shape=(jax.ShapeDtypeStruct((B, Cout, 1), jnp.float32),
                       jax.ShapeDtypeStruct((B, Cout, 1), jnp.float32)),
            grid=grid,
            in_specs=[x_spec, w_spec, vec_spec],
            out_specs=(pl.BlockSpec((1, Cout, 1), lambda b, n: (b, 0, 0)),
                       pl.BlockSpec((1, Cout, 1), lambda b, n: (b, 0, 0))),
            compiler_params=pltpu.CompilerParams(
                dimension_semantics=("parallel", "arbitrary"),
                vmem_limit_bytes=_VMEM_LIMIT_BYTES),
            cost_estimate=pl.CostEstimate(
                flops=conv_flops,
                transcendentals=0,
                bytes_accessed=B * Cin * N * itemsize + w_bytes + 2 * B * Cout * 4),
        )(x, w, bias_f32.reshape(Cout, 1))

        total_sum = jnp.sum(psum[:, :, 0], axis=0)      # (Cout,), f32
        total_sq = jnp.sum(psumsq[:, :, 0], axis=0)     # (Cout,), f32
        mean = total_sum / M
        # NOTE: E[y^2] - E[y]^2 in f32; clamp guards tiny negatives from cancellation.
        var = jnp.maximum(total_sq / M - mean * mean, 0.0)   # biased, matches PyTorch normalization
        inv_std = lax.rsqrt(var + BN_EPS)
        scale = gamma.astype(jnp.float32) * inv_std                      # (Cout,)
        shift = scale * (bias_f32 - mean) + beta.astype(jnp.float32)     # (Cout,)
    else:
        scale = jnp.ones((Cout,), jnp.float32)
        shift = bias_f32

    out = pl.pallas_call(
        functools.partial(_conv_affine_relu_kernel, with_relu=with_relu),
        out_shape=jax.ShapeDtypeStruct((B, Cout, N), x.dtype),
        grid=grid,
        in_specs=[x_spec, w_spec, vec_spec, vec_spec],
        out_specs=pl.BlockSpec((1, Cout, TN), lambda b, n: (b, 0, n)),
        compiler_params=pltpu.CompilerParams(
            dimension_semantics=("parallel", "parallel"),
            vmem_limit_bytes=_VMEM_LIMIT_BYTES),
        cost_estimate=pl.CostEstimate(
            flops=conv_flops,
            transcendentals=0,
            bytes_accessed=(B * Cin * N + B * Cout * N) * itemsize + w_bytes),
    )(x, w, scale.reshape(Cout, 1), shift.reshape(Cout, 1))

    # TODO(synk): BatchNorm1d running_mean/running_var buffer updates (training-mode
    # side effect) are not emitted; only the forward activation is returned.
    return out


def _reference(x, weight, bias, gamma, beta, *, with_bn=True, with_relu=True):
    y = jnp.einsum('bcn,oc->bon', x, weight[:, :, 0]) + bias[None, :, None]
    if with_bn:
        mean = jnp.mean(y, axis=(0, 2), keepdims=True)
        var = jnp.var(y, axis=(0, 2), keepdims=True)  # biased, like PyTorch's normalization
        y = gamma[None, :, None] * (y - mean) / jnp.sqrt(var + BN_EPS) + beta[None, :, None]
    if with_relu:
        y = jnp.maximum(y, 0.0)
    return y


if __name__ == "__main__":
    # grid = (4, 2) with TN = 512: exercises the tiled/pipelined path and the
    # cross-tile BN accumulation while staying small.
    B, Cin, Cout, N = 4, 8, 16, 1024

    key = jax.random.PRNGKey(0)
    kx, kw, kb, kg, kbeta = jax.random.split(key, 5)

    x = jax.random.normal(kx, (B, Cin, N), dtype=jnp.float32)

    # nn.Conv1d default init: U(-k, k), k = 1/sqrt(Cin*kernel_size)
    k = 1.0 / (Cin ** 0.5)
    weight = jax.random.uniform(kw, (Cout, Cin, 1), minval=-k, maxval=k, dtype=jnp.float32)
    bias = jax.random.uniform(kb, (Cout,), minval=-k, maxval=k, dtype=jnp.float32)
    # non-trivial BN params to actually exercise the scale/shift path
    gamma = 1.0 + 0.1 * jax.random.normal(kg, (Cout,), dtype=jnp.float32)
    beta = 0.1 * jax.random.normal(kbeta, (Cout,), dtype=jnp.float32)

    out = conv1d_forward(x, weight, bias, gamma, beta, with_bn=True, with_relu=True)
    out = jax.block_until_ready(out)
    ref = _reference(x, weight, bias, gamma, beta, with_bn=True, with_relu=True)
    assert out.shape == (B, Cout, N)
    assert jnp.allclose(out, ref, atol=1e-4, rtol=1e-4), "mismatch vs reference (bn+relu)"

    out2 = conv1d_forward(x, weight, bias, gamma, beta, with_bn=False, with_relu=False)
    out2 = jax.block_until_ready(out2)
    ref2 = _reference(x, weight, bias, gamma, beta, with_bn=False, with_relu=False)
    assert jnp.allclose(out2, ref2, atol=1e-4, rtol=1e-4), "mismatch vs reference (plain conv)"

    print("KERNEL_OK")
</pallas_src>

<mosaic_0001>
module attributes {stable_mosaic.version = 11 : i64} {
  func.func @_stats_kernel(%arg0: i32, %arg1: i32, %arg2: memref<1x8x512xf32, #tpu.memory_space<vmem>>, %arg3: memref<16x8xf32, #tpu.memory_space<vmem>>, %arg4: memref<16x1xf32, #tpu.memory_space<vmem>>, %arg5: memref<1x16x1xf32, #tpu.memory_space<vmem>>, %arg6: memref<1x16x1xf32, #tpu.memory_space<vmem>>) attributes {dimension_semantics = [#tpu.dimension_semantics<parallel>, #tpu.dimension_semantics<arbitrary>], iteration_bounds = array<i64: 4, 2>, scalar_prefetch = 0 : i64, scratch_operands = 0 : i64, tpu.core_type = #tpu.core_type<tc>, window_params = [{transform_indices = @transform_0, window_bounds = array<i64: 1, 8, 512>}, {pipeline_mode = #tpu.pipeline_mode<synchronous>, transform_indices = @transform_1, window_bounds = array<i64: 16, 8>}, {pipeline_mode = #tpu.pipeline_mode<synchronous>, transform_indices = @transform_2, window_bounds = array<i64: 16, 1>}, {transform_indices = @transform_3, window_bounds = array<i64: 1, 16, 1>}, {transform_indices = @transform_4, window_bounds = array<i64: 1, 16, 1>}]} {
    %c0_i32 = arith.constant 0 : i32
    %0 = arith.cmpi eq, %arg1, %c0_i32 : i32
    %1 = arith.extui %0 : i1 to i32
    %c0_i32_0 = arith.constant 0 : i32
    %2 = arith.cmpi ne, %1, %c0_i32_0 : i32
    scf.if %2 {
      %cst_21 = arith.constant 0.000000e+00 : f32
      %27 = vector.broadcast %cst_21 : f32 to vector<1x16x1xf32>
      %c0_22 = arith.constant 0 : index
      %c0_23 = arith.constant 0 : index
      %c0_24 = arith.constant 0 : index
      %28 = vector.load %arg5[%c0_22, %c0_23, %c0_24] : memref<1x16x1xf32, #tpu.memory_space<vmem>>, vector<1x16x1xf32>
      tpu.vector_store %arg5[%c0_22, %c0_23, %c0_24], %27 {strides = array<i32>} : memref<1x16x1xf32, #tpu.memory_space<vmem>>, vector<1x16x1xf32>,
      %cst_25 = arith.constant 0.000000e+00 : f32
      %29 = vector.broadcast %cst_25 : f32 to vector<1x16x1xf32>
      %c0_26 = arith.constant 0 : index
      %c0_27 = arith.constant 0 : index
      %c0_28 = arith.constant 0 : index
      %30 = vector.load %arg6[%c0_26, %c0_27, %c0_28] : memref<1x16x1xf32, #tpu.memory_space<vmem>>, vector<1x16x1xf32>
      tpu.vector_store %arg6[%c0_26, %c0_27, %c0_28], %29 {strides = array<i32>} : memref<1x16x1xf32, #tpu.memory_space<vmem>>, vector<1x16x1xf32>,
    } else {
    }
    %c0 = arith.constant 0 : index
    %c0_1 = arith.constant 0 : index
    %3 = vector.load %arg3[%c0, %c0_1] : memref<16x8xf32, #tpu.memory_space<vmem>>, vector<16x8xf32>
    %c0_2 = arith.constant 0 : index
    %c0_3 = arith.constant 0 : index
    %c0_4 = arith.constant 0 : index
    %4 = vector.load %arg2[%c0_2, %c0_3, %c0_4] : memref<1x8x512xf32, #tpu.memory_space<vmem>>, vector<1x8x512xf32>
    %5 = vector.shape_cast %4 : vector<1x8x512xf32> to vector<8x512xf32>
    %cst = arith.constant dense<0.000000e+00> : vector<16x512xf32>
    %6 = tpu.matmul %3, %5, %cst {dimension_numbers = #tpu.dot_dimension_numbers<[1], [0], [0], [1], [0, 0, 1, 1], [], []>} : vector<16x8xf32>, vector<8x512xf32>, vector<16x512xf32> -> vector<16x512xf32>
    %c0_5 = arith.constant 0 : index
    %c0_6 = arith.constant 0 : index
    %7 = vector.load %arg4[%c0_5, %c0_6] : memref<16x1xf32, #tpu.memory_space<vmem>>, vector<16x1xf32>
    %8 = vector.broadcast %7 : vector<16x1xf32> to vector<16x512xf32>
    %9 = arith.addf %6, %8 : vector<16x512xf32>
    %c0_7 = arith.constant 0 : index
    %c0_8 = arith.constant 0 : index
    %c0_9 = arith.constant 0 : index
    %10 = vector.load %arg5[%c0_7, %c0_8, %c0_9] : memref<1x16x1xf32, #tpu.memory_space<vmem>>, vector<1x16x1xf32>
    %11 = vector.shape_cast %10 : vector<1x16x1xf32> to vector<16x1xf32>
    %cst_10 = arith.constant dense<0.000000e+00> : vector<16xf32>
    %12 = vector.multi_reduction <add>, %9, %cst_10 [1] : vector<16x512xf32> to vector<16xf32>
    %13 = vector.shape_cast %12 : vector<16xf32> to vector<16x1xf32>
    %14 = arith.addf %11, %13 : vector<16x1xf32>
    %c0_11 = arith.constant 0 : index
    %c0_12 = arith.constant 0 : index
    %c0_13 = arith.constant 0 : index
    %15 = vector.load %arg5[%c0_11, %c0_12, %c0_13] : memref<1x16x1xf32, #tpu.memory_space<vmem>>, vector<1x16x1xf32>
    %16 = vector.shape_cast %15 : vector<1x16x1xf32> to vector<16x1xf32>
    %17 = vector.shape_cast %14 : vector<16x1xf32> to vector<1x16x1xf32>
    tpu.vector_store %arg5[%c0_11, %c0_12, %c0_13], %17 {strides = array<i32>} : memref<1x16x1xf32, #tpu.memory_space<vmem>>, vector<1x16x1xf32>,
    %c0_14 = arith.constant 0 : index
    %c0_15 = arith.constant 0 : index
    %c0_16 = arith.constant 0 : index
    %18 = vector.load %arg6[%c0_14, %c0_15, %c0_16] : memref<1x16x1xf32, #tpu.memory_space<vmem>>, vector<1x16x1xf32>
    %19 = vector.shape_cast %18 : vector<1x16x1xf32> to vector<16x1xf32>
    %20 = arith.mulf %9, %9 : vector<16x512xf32>
    %cst_17 = arith.constant dense<0.000000e+00> : vector<16xf32>
    %21 = vector.multi_reduction <add>, %20, %cst_17 [1] : vector<16x512xf32> to vector<16xf32>
    %22 = vector.shape_cast %21 : vector<16xf32> to vector<16x1xf32>
    %23 = arith.addf %19, %22 : vector<16x1xf32>
    %c0_18 = arith.constant 0 : index
    %c0_19 = arith.constant 0 : index
    %c0_20 = arith.constant 0 : index
    %24 = vector.load %arg6[%c0_18, %c0_19, %c0_20] : memref<1x16x1xf32, #tpu.memory_space<vmem>>, vector<1x16x1xf32>
    %25 = vector.shape_cast %24 : vector<1x16x1xf32> to vector<16x1xf32>
    %26 = vector.shape_cast %23 : vector<16x1xf32> to vector<1x16x1xf32>
    tpu.vector_store %arg6[%c0_18, %c0_19, %c0_20], %26 {strides = array<i32>} : memref<1x16x1xf32, #tpu.memory_space<vmem>>, vector<1x16x1xf32>,
    return
  }
  func.func @transform_0(%arg0: i32, %arg1: i32) -> (i32, i32, i32) {
    %c0_i32 = arith.constant 0 : i32
    %c0_i32_0 = arith.constant 0 : i32
    return %arg0, %c0_i32, %arg1 : i32, i32, i32
  }
  func.func @transform_1(%arg0: i32, %arg1: i32) -> (i32, i32) {
    %c0_i32 = arith.constant 0 : i32
    %c0_i32_0 = arith.constant 0 : i32
    %c0_i32_1 = arith.constant 0 : i32
    return %c0_i32, %c0_i32_0 : i32, i32
  }
  func.func @transform_2(%arg0: i32, %arg1: i32) -> (i32, i32) {
    %c0_i32 = arith.constant 0 : i32
    %c0_i32_0 = arith.constant 0 : i32
    %c0_i32_1 = arith.constant 0 : i32
    return %c0_i32, %c0_i32_0 : i32, i32
  }
  func.func @transform_3(%arg0: i32, %arg1: i32) -> (i32, i32, i32) {
    %c0_i32 = arith.constant 0 : i32
    %c0_i32_0 = arith.constant 0 : i32
    %c0_i32_1 = arith.constant 0 : i32
    return %arg0, %c0_i32, %c0_i32_0 : i32, i32, i32
  }
  func.func @transform_4(%arg0: i32, %arg1: i32) -> (i32, i32, i32) {
    %c0_i32 = arith.constant 0 : i32
    %c0_i32_0 = arith.constant 0 : i32
    %c0_i32_1 = arith.constant 0 : i32
    return %arg0, %c0_i32, %c0_i32_0 : i32, i32, i32
  }
}

</mosaic_0001>

<bundles_post_ra>
// kernel: tpu_custom_call.1
= control target key start
LH: loop header
LB: loop body
LE: loop exit
PB: predicated region body
PF: predicated region fallthrough
CT: control target
= control target key end

     0   :  { %10 = vsyncpa [#allocation3], 0  ;;  %s908_s0 = inlined_call_operand.hbm [shape: f32[4,8,1024], index: 0, kind: input, shape index: {}]   ;;  %s909_s1 = inlined_call_operand.vmem [shape: f32[16,8], index: 1, kind: input, shape index: {}]   ;;  %s910_s2 = inlined_call_operand.vmem [shape: f32[16,1], index: 2, kind: input, shape index: {}]   ;;  %s911_s3 = inlined_call_operand.vmem [shape: f32[4,16,1], index: 3, kind: output, shape index: {0}]   ;;  %s912_s4 = inlined_call_operand.vmem [shape: f32[4,16,1], index: 4, kind: output, shape index: {1}]  }
   0x1   :  { %12 = vsyncpa [#allocation3 + $0x1], 0  ;;  %s755_s15 = smov 0   ;;  %s757_s16 = smov 0  }
   0x2   :  { %s759_s17 = smov 0   ;;  %s761_s18 = smov 0  }
   0x3   :  { %s763_s19 = smov 0   ;;  %s765_s20 = smov 0  }
   0x4   :  { %s767_s21 = smov 0   ;;  %s769_s22 = smov 0  }
   0x5 LB: > { %s529_s23 = sadd.s32 4294967295, %s726_s22   ;;  %s27_s24 = sadd.s32 1, %s718_s20  ;;  %s726_s22 = sphi %s769_s22, %s18_s22   ;;  %s722_s21 = sphi %s767_s21, %s924_s21   ;;  %s718_s20 = sphi %s765_s20, %s923_s20   ;;  %s714_s19 = sphi %s763_s19, %s922_s19   ;;  %s710_s18 = sphi %s761_s18, %s921_s18   ;;  %s706_s17 = sphi %s759_s17, %s920_s17   ;;  %s702_s16 = sphi %s757_s16, %s919_s16   ;;  %s698_s15 = sphi %s755_s15, %s918_s15  }
   0x6   : > { %p28_p0 = scmp.ge.s32.totalorder %s27_s24, 2  ;;  %s30_s25 = sadd.s32 1, %s722_s21 }
   0x7   : > { %s39_s26 = sadd.s32 1, %s706_s17  ;;  %p46_p1 = scmp.ne.s32.totalorder %s706_s17, %s702_s16 }
   0x8   : > { %s926_s24 = smov (%p28_p0, %s27_s24), 0  ;;  %s928_s25 = smov (!%p28_p0, %s30_s25), %s722_s21 }
   0x9   : > { %s35_s27 = ssub.s32 %s718_s20, %s926_s24  ;;  %p47_p2 = scmp.eq.s32.totalorder %s726_s22, 0 }
   0xa   : > { %p32_p3 = scmp.ge.s32.totalorder %s928_s25, 4  ;;  %p52_p4 = scmp.ne.s32.totalorder %s702_s16, %s698_s15 }
   0xb   : > { %p806_p5 = por %p47_p2, %p46_p1  ;;  %p53_p6 = scmp.eq.s32.totalorder %s529_s23, 0 }
   0xc   : > { %s930_s25 = smov (%p32_p3, %s928_s25), 0  ;;  %p562_p8 = scmp.lt.s32.totalorder %s726_s22, 8 }
   0xd   : > { %915 = sst [smem:[#allocation5_spill]] %s930_s25  ;;  %p812_p7 = por %p53_p6, %p52_p4 }
   0xe   : > { %s34_s30 = ssub.s32 %s722_s21, %s930_s25  ;;  %s176_s6 = sand.u32 1, %s706_s17  }
   0xf   : > { %s36_s5 = sor.u32 %s35_s27, %s34_s30  ;;  %s533_s7 = sshll.u32 %s176_s6, 5 }
  0x10   : > { %p37_p9 = scmp.eq.s32.totalorder %s36_s5, 0  ;;  %s534_s8 = sshll.u32 %s718_s20, 2 }
  0x11   : > { %s535_s10 = sshll.u32 %s722_s21, 3  ;;  %s180_s12 = scalar_lea.vmem [#allocation2], %s533_s7 }
  0x12   : > { %s822_s9 = scalar_select %p37_p9, %s706_s17, %s39_s26  }
  0x13   : > { %s185_s11 = sadd.s32 %s535_s10, %s534_s8  ;;  %s191_s13 = sshll.u32 %s180_s12, 4  ;;  %s192_s13 = int_to_ptr.vmem [resolvable:$true] %s191_s13 }
  0x14   : > { %s536_s14 = sshll.u32 %s185_s11, 3  ;;  %p559_p10 = pnand %p562_p8, %p806_p5 }
  0x15   : > { %s187_s25 = scalar_lea.hbm %s908_s0, %s536_s14  ;;  %p537_p11 = scmp.ge.s32.totalorder %s726_s22, 1 }
  0x16   : > { %s189_s27 = sshll.u32 %s187_s25, 4  ;;  %s177_s30 = scalar_lea.sflag [#allocation3], %s176_s6  ;;  %s190_s27 = int_to_ptr.hbm [resolvable:$true] %s189_s27 }
  0x17   : > { %561 = dma.hbm_to_vmem [thread:$0]  (!%p559_p10), %s190_s27, 512, %s192_s13, %s177_s30  }
  0x18   : > { %p196_p12 = scmp.lt.s32.totalorder %s726_s22, 9 }
  0x1a   : > { %p197_p13 = pnand %p537_p11, %p196_p12 }
  0x1b   : > { %s202_s26 = sand.u32 (!%p197_p13), 1, %s702_s16  }
  0x1c   : > { %200 = sbr.rel (%p197_p13) target bundleno = 317 (0x13d), region = 32  ;;  %s538_s5 = sshll.u32 (!%p197_p13), %s202_s26, 5 }
  0x1d   : > { %s203_s7 = scalar_lea.sflag (!%p197_p13), [#allocation3], %s202_s26  ;;  %s206_s8 = scalar_lea.vmem (!%p197_p13), [#allocation2], %s538_s5 }
  0x21   : > { %693 = dma.done.wait (%p812_p7), %s203_s7, 512  }
  0x22   : > { %695 = vsyncadd (%p812_p7), %s203_s7, 4294966784  ;;  %p238_p0 = scmp.lt.s32.totalorder %s714_s19, 3  ;;  %p543_p1 = scmp.ne.s32.totalorder %s710_s18, 0 }
  0x24   : > { %s932_s19 = smov (!%p238_p0, %s714_s19), 3  ;;  %251 = sbr.rel (%p543_p1) target bundleno = 46 (0x2e), region = 40 }
  0x25   : > { %s554_s25 = sshll.u32 %s932_s19, 4 }
  0x26   : > { %s844_s10 = scalar_lea.vmem %s911_s3, %s554_s25  ;;  %s849_s13 = scalar_lea.vmem %s912_s4, %s554_s25 }
  0x29   : > { %vm252_vm0 = vcmask 7168   ;;  %v728_v0 = vmov 0.0  }
  0x2a   : > { %253 = vst.msk [vmem:[%s844_s10] sm:$0xff] %vm252_vm0, %v728_v0 }
  0x2b   : > { %254 = vst.msk [vmem:[%s844_s10 + $0x8] sm:$0xff] %vm252_vm0, %v728_v0 }
  0x2c   : > { %255 = vst.msk [vmem:[%s849_s13] sm:$0xff] %vm252_vm0, %v728_v0 }
  0x2d   : > { %256 = vst.msk [vmem:[%s849_s13 + $0x8] sm:$0xff] %vm252_vm0, %v728_v0 }
  0x2e PF: > { %v259_v1 = vld [vmem:[%s206_s8] sm:$0xff]  ;;  %v260_v2 = vld [vmem:[%s206_s8 + $0x8] sm:$0xff]  ;;  %v261_v3 = vld [vmem:[%s206_s8 + $0x10] sm:$0xff]  ;;  %vm275_vm1 = vcmask 64512   ;;  %v729_v7 = vmov 0   ;;  %vm388_vm2 = vcmask 7168  }
  0x2f   : > { %297 = vmatpush.msra.mxu0 %v259_v1  ;;  %320 = vmatpush.msra.mxu1 %v260_v2  ;;  %v262_v4 = vld [vmem:[%s206_s8 + $0x18] sm:$0xff]  ;;  %v257_v5 = vld [vmem:[%s909_s1] sm:$0xff]  ;;  %v258_v8 = vld [vmem:[%s909_s1 + $0x8] sm:$0xff] }
  0x30   : > { %343 = vmatpush.msra.mxu2 %v261_v3  ;;  %366 = vmatpush.msra.mxu3 %v262_v4  ;;  %v263_v6 = vld [vmem:[%s910_s2] sm:$0xff]  ;;  %v264_v9 = vld [vmem:[%s910_s2 + $0x8] sm:$0xff] }
  0x31   : > { %544 = vmatmul.msk.f32.vlgmr.msra.gmra.mxu0 %vm275_vm1, %v257_v5  ;;  %546 = vmatmul.msk.f32.vlgmr.msra.gmra.mxu1 %vm275_vm1, %v257_v5  ;;  %v374_v48 = vld [vmem:[%s844_s10] sm:$0xff] }
  0x32   : > { %548 = vmatmul.msk.f32.vlgmr.msra.gmra.mxu2 %vm275_vm1, %v257_v5  ;;  %550 = vmatmul.msk.f32.vlgmr.msra.gmra.mxu3 %vm275_vm1, %v257_v5  ;;  %v375_v54 = vld [vmem:[%s844_s10 + $0x8] sm:$0xff] }
  0x33   : > { %629 = vset.pattern.permute.xlu0 %v729_v7  ;;  %v391_v50 = vld [vmem:[%s849_s13] sm:$0xff] }
  0x34   : > { %267 = vperm.xlu0 %629, %v263_v6   ;;  %v392_v56 = vld [vmem:[%s849_s13 + $0x8] sm:$0xff] }
  0x39   : > { %545 = vmatmul.msk.f32.gmra.mxu0 %vm275_vm1, %v258_v8  ;;  %547 = vmatmul.msk.f32.gmra.mxu1 %vm275_vm1, %v258_v8 }
  0x3a   : > { %549 = vmatmul.msk.f32.gmra.mxu2 %vm275_vm1, %v258_v8  ;;  %551 = vmatmul.msk.f32.gmra.mxu3 %vm275_vm1, %v258_v8 }
  0x3c   : > { %272 = vperm.xlu0 %629, %v264_v9  }
  0xa6   : > { %v268_v10 = vpop.permute.xlu0 %267 }
  0xae   : > { %v299_v11 = vpop.f32.mrf.mxu0  ;;  %v322_v12 = vpop.f32.mrf.mxu1 }
  0xaf   : > { %v300_v13 = vadd.f32 %v299_v11, %v268_v10  ;;  %v323_v14 = vadd.f32 %v322_v12, %v268_v10  ;;  %v273_v25 = vpop.permute.xlu0 %272 }
  0xb1   : > { %v393_v15 = vmul.f32 %v300_v13, %v300_v13  ;;  %v394_v16 = vmul.f32 %v323_v14, %v323_v14  ;;  %v376_v17 = vadd.f32 %v323_v14, %v300_v13 }
  0xb3   : > { %v401_v24 = vadd.f32 %v394_v16, %v393_v15 }
  0xb5   : > { %v345_v18 = vpop.f32.mrf.mxu2  ;;  %v368_v19 = vpop.f32.mrf.mxu3 }
  0xb6   : > { %v346_v20 = vadd.f32 %v345_v18, %v268_v10  ;;  %v369_v21 = vadd.f32 %v368_v19, %v268_v10  ;;  %v302_v22 = vpop.f32.mrf.mxu0  ;;  %v325_v23 = vpop.f32.mrf.mxu1 }
  0xb7   : > { %v303_v27 = vadd.f32 %v302_v22, %v273_v25  ;;  %v326_v28 = vadd.f32 %v325_v23, %v273_v25 }
  0xb8   : > { %v395_v26 = vmul.f32 %v346_v20, %v346_v20  ;;  %v377_v29 = vadd.f32 %v376_v17, %v346_v20  ;;  %v396_v31 = vmul.f32 %v369_v21, %v369_v21 }
  0xb9   : > { %v397_v33 = vmul.f32 %v303_v27, %v303_v27  ;;  %v398_v34 = vmul.f32 %v326_v28, %v326_v28  ;;  %v381_v38 = vadd.f32 %v326_v28, %v303_v27 }
  0xba   : > { %v378_v30 = vadd.f32 %v377_v29, %v369_v21  ;;  %v402_v32 = vadd.f32 %v401_v24, %v395_v26 }
  0xbb   : > { %v406_v41 = vadd.f32 %v398_v34, %v397_v33 }
  0xbc   : > { %379 = vadd.xlane.f32.xlu1 %v378_v30  ;;  %v403_v35 = vadd.f32 %v402_v32, %v396_v31 }
  0xbd   : > { %v348_v36 = vpop.f32.mrf.mxu2  ;;  %v371_v37 = vpop.f32.mrf.mxu3 }
  0xbe   : > { %v349_v39 = vadd.f32 %v348_v36, %v273_v25  ;;  %v372_v40 = vadd.f32 %v371_v37, %v273_v25  ;;  %404 = vadd.xlane.f32.xlu2 %v403_v35 }
  0xc0   : > { %v382_v42 = vadd.f32 %v381_v38, %v349_v39  ;;  %v399_v43 = vmul.f32 %v349_v39, %v349_v39  ;;  %v400_v44 = vmul.f32 %v372_v40, %v372_v40 }
  0xc2   : > { %v383_v45 = vadd.f32 %v382_v42, %v372_v40  ;;  %v407_v46 = vadd.f32 %v406_v41, %v399_v43 }
  0xc4   : > { %384 = vadd.xlane.f32.xlu1 %v383_v45  ;;  %v408_v47 = vadd.f32 %v407_v46, %v400_v44 }
  0xc6   : > { %409 = vadd.xlane.f32.xlu2 %v408_v47 }
 0x12f   : > { %v380_v49 = vpop.xlane.xlu1 %379 }
 0x130   : > { %v386_v51 = vadd.f32 %v380_v49, %v374_v48 }
 0x131   : > { %v405_v52 = vpop.xlane.xlu2 %404 }
 0x132   : > { %389 = vst.msk [vmem:[%s844_s10] sm:$0xff] %vm388_vm2, %v386_v51  ;;  %v411_v53 = vadd.f32 %v405_v52, %v391_v50 }
 0x134   : > { %413 = vst.msk [vmem:[%s849_s13] sm:$0xff] %vm388_vm2, %v411_v53 }
 0x137   : > { %v385_v55 = vpop.xlane.xlu1 %384 }
 0x138   : > { %v387_v57 = vadd.f32 %v385_v55, %v375_v54 }
 0x139   : > { %v410_v58 = vpop.xlane.xlu2 %409 }
 0x13a   : > { %390 = vst.msk [vmem:[%s844_s10 + $0x8] sm:$0xff] %vm388_vm2, %v387_v57  ;;  %v412_v59 = vadd.f32 %v410_v58, %v392_v56 }
 0x13c   : > { %414 = vst.msk [vmem:[%s849_s13 + $0x8] sm:$0xff] %vm388_vm2, %v412_v59 }
 0x13d PF: > { %s18_s22 = sadd.s32 1, %s726_s22   ;;  %s917_s26 = sld [smem:[#allocation5_spill]] }
 0x13e   : > { %p15_p2 = scmp.ge.s32.totalorder %s18_s22, 10   ;;  %s918_s15 = smov %s702_s16 }
 0x13f   : > { %s919_s16 = smov %s706_s17  ;;  %s920_s17 = smov %s822_s9 }
 0x140   : > { %s921_s18 = smov %s718_s20  ;;  %s922_s19 = smov %s722_s21 }
 0x141   : > { %s923_s20 = smov %s926_s24  ;;  %17 = sbr.rel (!%p15_p2) target bundleno = 5 (0x5), region = 88 }
 0x143   : > { %s924_s21 = smov %s917_s26 }
 0x146   :  { %452 = vsyncpa [#allocation3], 1 }
 0x147   :  { %454 = vsyncpa [#allocation3 + $0x1], 1 }

</bundles_post_ra>
